<compile_context>
chip_gen: v6e
topology: v6e:2x2x1
jax: 0.10.0
libtpu: 0.0.40
codegen_flags: <defaults>
</compile_context>

<pallas_src>
import math

import jax
import jax.numpy as jnp
from jax.experimental import pallas as pl
from jax.experimental.pallas import tpu as pltpu


# ----------------------------- kernels ---------------------------------------

def _pe_add_kernel_3d(x_ref, pe_ref, o_ref):
    # x:(ts, N, E)  pe:(ts, 1, E) -> o:(ts, N, E); batch broadcast in-register.
    o_ref[...] = x_ref[...] + pe_ref[...]


def _make_pe_add_kernel_flat(n_rep: int):
    # x:(ts, N*E)  pe:(ts, E) -> o:(ts, N*E); pe tiled across the batch in-register.
    def kernel(x_ref, pe_ref, o_ref):
        pe = pe_ref[...]
        if n_rep > 1:
            pe = jnp.tile(pe, (1, n_rep))
        o_ref[...] = x_ref[...] + pe
    return kernel


# ----------------------------- host helpers ----------------------------------

def make_pos_embedding(emb_size: int, maxlen: int = 5000,
                       dtype=jnp.float32) -> jnp.ndarray:
    """Same buffer as the PyTorch module's register_buffer('pos_embedding'),
    pre-cast ONCE to the activation dtype (no per-call convert)."""
    den = jnp.exp(
        -jnp.arange(0, emb_size, 2, dtype=jnp.float32) * (math.log(10000.0) / emb_size)
    )
    pos = jnp.arange(0, maxlen, dtype=jnp.float32).reshape(maxlen, 1)
    pe = jnp.zeros((maxlen, emb_size), jnp.float32)
    pe = pe.at[:, 0::2].set(jnp.sin(pos * den))
    pe = pe.at[:, 1::2].set(jnp.cos(pos * den))
    return pe[:, None, :].astype(dtype)  # (maxlen, 1, emb_size) == unsqueeze(-2)


def _round_up(x: int, m: int) -> int:
    return ((x + m - 1) // m) * m


def _pick_seq_tile(S: int, N: int, E: int, dtype) -> int:
    """Byte-budgeted sequence tile.

    Per grid step the double-buffered VMEM working set is roughly
        2 * (ts*N*E [x] + ts*N*E [out] + ts*E [pe]) * itemsize.
    Cap it at ~16 MiB (safe across v5e/v6e/v7x), keep ts a multiple of the
    sublane packing (8 f32 / 16 bf16) unless the full S fits in one block,
    and prefer >= 2 grid steps so the 'parallel' axis can use both v7x TCs.
    """
    dsize = jnp.dtype(dtype).itemsize
    sub = 8 * max(1, 4 // dsize)               # sublane granularity per dtype
    row_bytes = (2 * N * E + E) * dsize        # x + out + pe, per sequence row
    budget = 16 * 1024 * 1024                  # double-buffered working-set cap
    max_rows = (budget // 2) // max(1, row_bytes)
    max_rows = max(sub, (max_rows // sub) * sub)
    if S >= 2 * sub:
        ts = min(max_rows, _round_up(pl.cdiv(S, 2), sub))   # >= 2 grid steps
    else:
        ts = min(max_rows, S)                  # single block == full array dim
    return max(1, ts)


# ----------------------------- wrapper ----------------------------------------

def positional_encoding(token_embedding: jnp.ndarray,
                        pos_embedding: jnp.ndarray) -> jnp.ndarray:
    """token_embedding: (S, N, E) [batch_first=False]; pos_embedding: (maxlen, 1, E)."""
    S, N, E = token_embedding.shape
    maxlen = pos_embedding.shape[0]
    if S > maxlen:
        raise ValueError(f"sequence length {S} exceeds maxlen {maxlen}")
    if pos_embedding.dtype != token_embedding.dtype:
        # Should be pre-cast at init (make_pos_embedding); this is a fallback.
        pos_embedding = pos_embedding.astype(token_embedding.dtype)

    dtype = token_embedding.dtype
    dsize = jnp.dtype(dtype).itemsize
    ts = _pick_seq_tile(S, N, E, dtype)
    grid = (pl.cdiv(S, ts),)

    compiler_params = pltpu.CompilerParams(
        dimension_semantics=("parallel",),       # S-tiles shard across TCs (v7x)
        vmem_limit_bytes=32 * 1024 * 1024,       # raise v5e's 16 MiB scoped default
    )
    cost = pl.CostEstimate(
        flops=S * N * E,
        transcendentals=0,
        bytes_accessed=(2 * S * N * E + S * E) * dsize,
    )

    if N < 8:
        # Small batch: flatten (N, E) onto the lane axis for dense 8x128 vregs
        # and unmasked stores; pe stays (maxlen, E) in HBM (broadcast happens
        # in-register inside the kernel, never materialized in HBM).
        x2 = token_embedding.reshape(S, N * E)
        pe2 = pos_embedding.reshape(maxlen, E)
        out2 = pl.pallas_call(
            _make_pe_add_kernel_flat(N),
            out_shape=jax.ShapeDtypeStruct((S, N * E), dtype),
            grid=grid,
            in_specs=[
                pl.BlockSpec((ts, N * E), lambda i: (i, 0)),
                pl.BlockSpec((ts, E), lambda i: (i, 0)),
            ],
            out_specs=pl.BlockSpec((ts, N * E), lambda i: (i, 0)),
            input_output_aliases={0: 0},         # pure read-modify-write of x
            compiler_params=compiler_params,
            cost_estimate=cost,
        )(x2, pe2)
        return out2.reshape(S, N, E)

    # Batch >= 8: keep (S, N, E); the (N, E) plane is already a dense
    # (sublane, lane) layout and pe broadcasts over the sublane axis.
    return pl.pallas_call(
        _pe_add_kernel_3d,
        out_shape=jax.ShapeDtypeStruct((S, N, E), dtype),
        grid=grid,
        in_specs=[
            pl.BlockSpec((ts, N, E), lambda i: (i, 0, 0)),
            pl.BlockSpec((ts, 1, E), lambda i: (i, 0, 0)),
        ],
        out_specs=pl.BlockSpec((ts, N, E), lambda i: (i, 0, 0)),
        input_output_aliases={0: 0},
        compiler_params=compiler_params,
        cost_estimate=cost,
    )(token_embedding, pos_embedding)


# ----------------------------- demo / check -----------------------------------

if __name__ == "__main__":
    EMB_SIZE = 32
    MAXLEN = 64

    key = jax.random.PRNGKey(0)
    pos_embedding = make_pos_embedding(EMB_SIZE, MAXLEN, dtype=jnp.float32)

    fwd = jax.jit(positional_encoding, donate_argnums=(0,))

    # (S, N): small-batch flattened path, batch>=8 3D path, partial-last-block path.
    for i, (S, N) in enumerate([(8, 2), (16, 8), (20, 2)]):
        k = jax.random.fold_in(key, i)
        x = jax.random.normal(k, (S, N, EMB_SIZE), dtype=jnp.float32)
        ref = jax.block_until_ready(x + pos_embedding[:S])  # before x is donated
        out = jax.block_until_ready(fwd(x, pos_embedding))
        assert out.shape == (S, N, EMB_SIZE), out.shape
        assert bool(jnp.all(jnp.isfinite(out)))
        assert bool(jnp.allclose(out, ref, atol=1e-6, rtol=1e-6)), ("mismatch", S, N)

    print("KERNEL_OK")
</pallas_src>

<mosaic_0001>
module attributes {stable_mosaic.version = 11 : i64} {
  func.func @kernel(%arg0: i32, %arg1: memref<8x64xf32, #tpu.memory_space<vmem>>, %arg2: memref<8x32xf32, #tpu.memory_space<vmem>>, %arg3: memref<8x64xf32, #tpu.memory_space<vmem>>) attributes {dimension_semantics = [#tpu.dimension_semantics<parallel>], iteration_bounds = array<i64: 1>, scalar_prefetch = 0 : i64, scratch_operands = 0 : i64, tpu.core_type = #tpu.core_type<tc>, window_params = [{transform_indices = @transform_0, window_bounds = array<i64: 8, 64>}, {transform_indices = @transform_1, window_bounds = array<i64: 8, 32>}, {transform_indices = @transform_2, window_bounds = array<i64: 8, 64>}]} {
    %c0 = arith.constant 0 : index
    %c0_0 = arith.constant 0 : index
    %0 = vector.load %arg2[%c0, %c0_0] : memref<8x32xf32, #tpu.memory_space<vmem>>, vector<8x32xf32>
    %1 = tpu.concatenate %0, %0 in 1 : vector<8x32xf32>, vector<8x32xf32> -> vector<8x64xf32>
    %c0_1 = arith.constant 0 : index
    %c0_2 = arith.constant 0 : index
    %2 = vector.load %arg1[%c0_1, %c0_2] : memref<8x64xf32, #tpu.memory_space<vmem>>, vector<8x64xf32>
    %3 = arith.addf %2, %1 : vector<8x64xf32>
    %c0_3 = arith.constant 0 : index
    %c0_4 = arith.constant 0 : index
    %4 = vector.load %arg3[%c0_3, %c0_4] : memref<8x64xf32, #tpu.memory_space<vmem>>, vector<8x64xf32>
    tpu.vector_store %arg3[%c0_3, %c0_4], %3 {strides = array<i32>} : memref<8x64xf32, #tpu.memory_space<vmem>>, vector<8x64xf32>,
    return
  }
  func.func @transform_0(%arg0: i32) -> (i32, i32) {
    %c0_i32 = arith.constant 0 : i32
    %c0_i32_0 = arith.constant 0 : i32
    return %arg0, %c0_i32 : i32, i32
  }
  func.func @transform_1(%arg0: i32) -> (i32, i32) {
    %c0_i32 = arith.constant 0 : i32
    %c0_i32_0 = arith.constant 0 : i32
    return %arg0, %c0_i32 : i32, i32
  }
  func.func @transform_2(%arg0: i32) -> (i32, i32) {
    %c0_i32 = arith.constant 0 : i32
    %c0_i32_0 = arith.constant 0 : i32
    return %arg0, %c0_i32 : i32, i32
  }
}

</mosaic_0001>

<bundles_post_ra>
// kernel: positional_encoding.1
= control target key start
LH: loop header
LB: loop body
LE: loop exit
PB: predicated region body
PF: predicated region fallthrough
CT: control target
= control target key end

     0   :  { %s27_s11 = smov 32   ;;  %vm16_vm0 = vcmask 261120   ;;  %vm20_vm1 = vcmask 523264   ;;  %s52_s1 = inlined_call_operand.vmem [shape: f32[64,32], index: 1, kind: input, shape index: {}]   ;;  %s53_s0 = inlined_call_operand.vmem [shape: f32[8,64], index: 0, kind: input, shape index: {}, may-alias: {0,2}]   ;;  %s54_s2 = inlined_call_operand.vmem [shape: f32[8,64], index: 2, kind: output, shape index: {}, may-alias: {0,2}]  }
   0x1   :  { %v11_v0 = vld [vmem:[%s52_s1] sm:$0xff] }
   0x2   :  { %13 = vrot.lane.b32.xlu0 %v11_v0, %s27_s11  ;;  %v18_v1 = vld [vmem:[%s53_s0] sm:$0xff] }
  0x74   :  { %v14_v2 = vpop.permute.xlu0 %13 }
  0x75   :  { %v17_v3 = vsel %vm16_vm0, %v11_v0, %v14_v2 }
  0x76   :  { %v19_v4 = vadd.f32 %v18_v1, %v17_v3 }
  0x78   :  { %21 = vst.msk [vmem:[%s54_s2] sm:$0xff] %vm20_vm1, %v19_v4 }

</bundles_post_ra>
